<compile_context>
chip_gen: v6e
topology: v6e:2x2x1
jax: 0.10.0
libtpu: 0.0.40
codegen_flags: <defaults>
</compile_context>

<pallas_src>
import math
from functools import partial

import numpy as np

import jax
import jax.numpy as jnp
from jax import lax
from jax.experimental import pallas as pl
from jax.experimental.pallas import tpu as pltpu


HALO = 128     # lane-aligned look-ahead; must be >= num_taps - orig (= 26 for 16k->8k)
N_TILE = 128   # output columns per strip (one lane width)


def _cdiv(a, b):
    return -(-a // b)


# ----------------------------------------------------------------------------
# Filter design (numpy, compile time): identical to torchaudio's
# _get_sinc_resample_kernel with resampling_method="sinc_interp_hann",
# lowpass_filter_width=6, rolloff=0.99 (the Resample defaults).
# ----------------------------------------------------------------------------
def sinc_resample_taps(orig_freq, new_freq, lowpass_filter_width=6, rolloff=0.99):
    gcd = math.gcd(int(orig_freq), int(new_freq))
    orig = int(orig_freq) // gcd
    new = int(new_freq) // gcd

    base_freq = min(orig, new) * rolloff
    width = int(math.ceil(lowpass_filter_width * orig / base_freq))

    idx = np.arange(-width, width + orig, dtype=np.float64)[None, :] / orig
    t = (np.arange(0, -new, -1, dtype=np.float64)[:, None] / new) + idx
    t = t * base_freq
    t = np.clip(t, -lowpass_filter_width, lowpass_filter_width)

    window = np.cos(t * math.pi / lowpass_filter_width / 2.0) ** 2
    t = t * math.pi
    scale = base_freq / orig

    safe_t = np.where(t == 0.0, 1.0, t)
    kernels = np.where(t == 0.0, 1.0, np.sin(safe_t) / safe_t)
    kernels = kernels * window * scale
    return kernels.astype(np.float32), width, orig, new  # (new, K), int, int, int


def _band_matrix(taps, n_tile, w_main, halo):
    """T[m, n] = taps[m - 2n]; rows [0, w_main) are the main window, rows
    [w_main, w_main+halo) the look-ahead. Baked in as a compile-time constant."""
    k = taps.shape[0]
    t = np.zeros((w_main + halo, n_tile), np.float32)
    cols = np.arange(n_tile)
    for j in range(k):
        t[2 * cols + j, cols] = taps[j]
    return t


# ----------------------------------------------------------------------------
# Kernel: one stacked 3-pass-bf16 matmul per grid step.
#   x_ref  : (b_tile, n_strips, w_main)  f32   main input windows (non-overlapping)
#   xh_ref : (b_tile, HALO)              f32   first HALO cols of the NEXT time block
#   thi/tlo: (w_main + HALO, n_tile)     bf16  band matrix, hi/lo bf16 split
#   o_ref  : (b_tile, n_strips, n_tile)  f32
# ----------------------------------------------------------------------------
def _resample_kernel(x_ref, xh_ref, thi_ref, tlo_ref, o_ref):
    b, s, k = x_ref.shape
    m = b * s

    x3 = x_ref[...]                                    # (b, s, w_main)
    x_main = x3.reshape(m, k)                          # free: s % 8 == 0

    # Look-ahead operand: strip s takes the first HALO cols of strip s+1 inside the
    # same block; the LAST strip of the block takes xh_ref (next block's first HALO
    # cols) -- never within-block data.
    if s > 1:
        hal = jnp.concatenate(
            [x3[:, 1:, :HALO], xh_ref[...].reshape(b, 1, HALO)], axis=1)
    else:
        hal = xh_ref[...].reshape(b, 1, HALO)
    hal = hal.reshape(m, HALO)

    xk = jnp.concatenate([x_main, hal], axis=1)        # (m, w_main + HALO) f32

    # Manual 3-pass bf16 split (== Precision.HIGH accuracy, guaranteed lowering):
    # products of bf16 operands are exact in the f32 MXU accumulator; only the
    # x_lo * t_lo term (~2^-16 relative) is dropped.
    x_hi = xk.astype(jnp.bfloat16)
    x_lo = (xk - x_hi.astype(jnp.float32)).astype(jnp.bfloat16)
    t_hi = thi_ref[...]
    t_lo = tlo_ref[...]

    acc = jnp.dot(x_hi, t_hi, preferred_element_type=jnp.float32)
    acc = acc + jnp.dot(x_lo, t_hi, preferred_element_type=jnp.float32)
    acc = acc + jnp.dot(x_hi, t_lo, preferred_element_type=jnp.float32)

    o_ref[...] = acc.reshape(b, s, acc.shape[-1])


# ----------------------------------------------------------------------------
# Wrapper
# ----------------------------------------------------------------------------
@partial(jax.jit, static_argnames=("orig_freq", "new_freq"))
def resample_pallas(waveform, orig_freq=16000, new_freq=8000):
    taps, width, orig, new = sinc_resample_taps(orig_freq, new_freq)
    assert new == 1 and orig == 2, (orig, new)  # module's 16k -> 8k only
    taps1 = taps[0]                              # (28,)

    n_tile = N_TILE
    w_main = orig * n_tile                       # 256

    shape = waveform.shape
    length = shape[-1]
    wave = waveform.astype(jnp.float32).reshape(-1, length)
    B = wave.shape[0]
    out_len = _cdiv(length, orig)

    # ---- batch tiling --------------------------------------------------------
    if B <= 8:
        b_tile = b_pad = B
    else:
        b_tile = min(32, _cdiv(B, 8) * 8)
        b_pad = _cdiv(B, b_tile) * b_tile

    # ---- time tiling (strips of 128 output cols stacked onto the MXU M axis) --
    strips = _cdiv(out_len, n_tile)
    s_target = max(32, 256 // b_tile)            # aim for >= ~256 stacked M rows
    if b_pad == b_tile and strips >= 16:
        # single batch tile: keep >= 2 time tiles so v7x can use both TensorCores
        s_target = min(s_target, _cdiv(strips, 2))
    n_strips = min(s_target, strips)
    n_strips = _cdiv(n_strips, 8) * 8            # multiple of 8 -> layout-free reshapes
    num_t = _cdiv(strips, n_strips)

    t_block = n_strips * n_tile                  # output cols per grid step
    w_block = orig * t_block                     # input cols per grid step
    out_strips = num_t * n_strips
    s_tot = out_strips + 1                       # +1 strip so the last halo is in range
    l_pad = s_tot * w_main

    # torchaudio pads `width` zeros on the left; pad right so every block plus its
    # HALO look-ahead stays in range (extra zeros never reach the kept outputs).
    wave_pad = jnp.pad(wave, ((0, b_pad - B), (width, l_pad - width - length)))
    wave3 = wave_pad.reshape(b_pad, s_tot, w_main)   # free bitcast view

    # band matrix (compile-time constant), split into hi/lo bf16 parts
    t_f32 = jnp.asarray(_band_matrix(taps1, n_tile, w_main, HALO))
    t_hi = t_f32.astype(jnp.bfloat16)
    t_lo = (t_f32 - t_hi.astype(jnp.float32)).astype(jnp.bfloat16)

    halo_blocks = w_block // HALO                # halo block-index stride (time axis)

    grid = (b_pad // b_tile, num_t)
    out3 = pl.pallas_call(
        _resample_kernel,
        out_shape=jax.ShapeDtypeStruct((b_pad, out_strips, n_tile), jnp.float32),
        grid=grid,
        in_specs=[
            # main input windows of this (batch, time) tile: (b_tile, n_strips, 256)
            pl.BlockSpec((b_tile, n_strips, w_main), lambda bi, ti: (bi, ti, 0)),
            # HALO-wide look-ahead into the next time tile (2-D view of the same pad)
            pl.BlockSpec((b_tile, HALO),
                         lambda bi, ti: (bi, (ti + 1) * halo_blocks)),
            # band matrices: constant block index -> DMA'd once, VMEM-resident
            pl.BlockSpec((w_main + HALO, n_tile), lambda bi, ti: (0, 0)),
            pl.BlockSpec((w_main + HALO, n_tile), lambda bi, ti: (0, 0)),
        ],
        out_specs=pl.BlockSpec((b_tile, n_strips, n_tile),
                               lambda bi, ti: (bi, ti, 0)),
        compiler_params=pltpu.CompilerParams(
            dimension_semantics=("parallel", "parallel"),
            vmem_limit_bytes=32 * 1024 * 1024,
            # let XLA fuse the zero-pad / reshape producers into the input windows
            allow_input_fusion=[True, True, False, False],
        ),
    )(wave3, wave_pad, t_hi, t_lo)

    out = out3.reshape(b_pad, out_strips * n_tile)[:B, :out_len]
    return out.reshape(shape[:-1] + (out_len,))


# ----------------------------------------------------------------------------
# Pure-JAX reference (mirrors torchaudio's _apply_sinc_resample_kernel).
# ----------------------------------------------------------------------------
def resample_ref(waveform, orig_freq=16000, new_freq=8000):
    taps, width, orig, new = sinc_resample_taps(orig_freq, new_freq)
    shape = waveform.shape
    length = shape[-1]
    wave = waveform.astype(jnp.float32).reshape(-1, length)
    wave_p = jnp.pad(wave, ((0, 0), (width, width + orig)))
    k = jnp.asarray(taps)[:, None, :]  # (new, 1, K) as OIH
    res = lax.conv_general_dilated(
        wave_p[:, None, :], k, window_strides=(orig,), padding="VALID",
        dimension_numbers=("NCH", "OIH", "NCH"),
        precision=lax.Precision.HIGHEST)
    res = jnp.transpose(res, (0, 2, 1)).reshape(wave.shape[0], -1)
    tgt = -(-length * new // orig)
    return res[:, :tgt].reshape(shape[:-1] + (tgt,))


if __name__ == "__main__":
    key = jax.random.PRNGKey(0)

    # 3-pass bf16 split ~= Precision.HIGH: keep a ~1e-4 tolerance (a real indexing /
    # halo bug would produce O(0.1-1) errors, so this still catches any such bug).
    ATOL = RTOL = 1e-4

    # canonical small example implied by the module: 2 channels x 128 samples @ 16 kHz
    wav0 = jax.random.normal(key, (2, 128), dtype=jnp.float32)
    out0 = jax.block_until_ready(resample_pallas(wav0))
    ref0 = jax.block_until_ready(resample_ref(wav0))
    assert out0.shape == ref0.shape == (2, 64), (out0.shape, ref0.shape)
    assert jnp.allclose(out0, ref0, atol=ATOL, rtol=RTOL), float(
        jnp.max(jnp.abs(out0 - ref0)))

    # extra shapes: multi time-tile grid with cross-block halo, batch tiling (B > 8),
    # and a 1-D (..., time) waveform.
    for i, shp in enumerate([(2, 40000), (11, 513), (777,)]):
        wav = jax.random.normal(jax.random.fold_in(key, i + 1), shp,
                                dtype=jnp.float32)
        out = jax.block_until_ready(resample_pallas(wav))
        ref = jax.block_until_ready(resample_ref(wav))
        assert out.shape == ref.shape, (shp, out.shape, ref.shape)
        assert jnp.allclose(out, ref, atol=ATOL, rtol=RTOL), (
            shp, float(jnp.max(jnp.abs(out - ref))))

    print("KERNEL_OK")
</pallas_src>

<mosaic_0001>
module attributes {stable_mosaic.version = 11 : i64} {
  func.func @_resample_kernel(%arg0: i32, %arg1: i32, %arg2: memref<2x8x256xf32, #tpu.memory_space<vmem>>, %arg3: memref<2x128xf32, #tpu.memory_space<vmem>>, %arg4: memref<384x128xbf16, #tpu.memory_space<vmem>>, %arg5: memref<384x128xbf16, #tpu.memory_space<vmem>>, %arg6: memref<2x8x128xf32, #tpu.memory_space<vmem>>) attributes {dimension_semantics = [#tpu.dimension_semantics<parallel>, #tpu.dimension_semantics<parallel>], iteration_bounds = array<i64: 1, 1>, scalar_prefetch = 0 : i64, scratch_operands = 0 : i64, tpu.core_type = #tpu.core_type<tc>, window_params = [{transform_indices = @transform_0, window_bounds = array<i64: 2, 8, 256>}, {transform_indices = @transform_1, window_bounds = array<i64: 2, 128>}, {pipeline_mode = #tpu.pipeline_mode<synchronous>, transform_indices = @transform_2, window_bounds = array<i64: 384, 128>}, {pipeline_mode = #tpu.pipeline_mode<synchronous>, transform_indices = @transform_3, window_bounds = array<i64: 384, 128>}, {transform_indices = @transform_4, window_bounds = array<i64: 2, 8, 128>}]} {
    %c0 = arith.constant 0 : index
    %c0_0 = arith.constant 0 : index
    %c0_1 = arith.constant 0 : index
    %0 = vector.load %arg2[%c0, %c0_0, %c0_1] : memref<2x8x256xf32, #tpu.memory_space<vmem>>, vector<2x8x256xf32>
    %1 = vector.shape_cast %0 : vector<2x8x256xf32> to vector<16x256xf32>
    %2 = vector.extract_strided_slice %0 {offsets = [0, 1, 0], sizes = [2, 7, 128], strides = [1, 1, 1]} : vector<2x8x256xf32> to vector<2x7x128xf32>
    %c0_2 = arith.constant 0 : index
    %c0_3 = arith.constant 0 : index
    %3 = vector.load %arg3[%c0_2, %c0_3] : memref<2x128xf32, #tpu.memory_space<vmem>>, vector<2x128xf32>
    %4 = vector.shape_cast %3 : vector<2x128xf32> to vector<2x1x128xf32>
    %5 = tpu.concatenate %2, %4 in 1 : vector<2x7x128xf32>, vector<2x1x128xf32> -> vector<2x8x128xf32>
    %6 = vector.shape_cast %5 : vector<2x8x128xf32> to vector<16x128xf32>
    %7 = tpu.concatenate %1, %6 in 1 : vector<16x256xf32>, vector<16x128xf32> -> vector<16x384xf32>
    %8 = arith.truncf %7 : vector<16x384xf32> to vector<16x384xbf16>
    %9 = arith.extf %8 : vector<16x384xbf16> to vector<16x384xf32>
    %10 = arith.subf %7, %9 : vector<16x384xf32>
    %11 = arith.truncf %10 : vector<16x384xf32> to vector<16x384xbf16>
    %c0_4 = arith.constant 0 : index
    %c0_5 = arith.constant 0 : index
    %12 = vector.load %arg4[%c0_4, %c0_5] : memref<384x128xbf16, #tpu.memory_space<vmem>>, vector<384x128xbf16>
    %c0_6 = arith.constant 0 : index
    %c0_7 = arith.constant 0 : index
    %13 = vector.load %arg5[%c0_6, %c0_7] : memref<384x128xbf16, #tpu.memory_space<vmem>>, vector<384x128xbf16>
    %cst = arith.constant dense<0.000000e+00> : vector<16x128xf32>
    %14 = tpu.matmul %8, %12, %cst {dimension_numbers = #tpu.dot_dimension_numbers<[1], [0], [0], [1], [0, 0, 1, 1], [], []>} : vector<16x384xbf16>, vector<384x128xbf16>, vector<16x128xf32> -> vector<16x128xf32>
    %cst_8 = arith.constant dense<0.000000e+00> : vector<16x128xf32>
    %15 = tpu.matmul %11, %12, %cst_8 {dimension_numbers = #tpu.dot_dimension_numbers<[1], [0], [0], [1], [0, 0, 1, 1], [], []>} : vector<16x384xbf16>, vector<384x128xbf16>, vector<16x128xf32> -> vector<16x128xf32>
    %16 = arith.addf %14, %15 : vector<16x128xf32>
    %cst_9 = arith.constant dense<0.000000e+00> : vector<16x128xf32>
    %17 = tpu.matmul %8, %13, %cst_9 {dimension_numbers = #tpu.dot_dimension_numbers<[1], [0], [0], [1], [0, 0, 1, 1], [], []>} : vector<16x384xbf16>, vector<384x128xbf16>, vector<16x128xf32> -> vector<16x128xf32>
    %18 = arith.addf %16, %17 : vector<16x128xf32>
    %19 = vector.shape_cast %18 : vector<16x128xf32> to vector<2x8x128xf32>
    %c0_10 = arith.constant 0 : index
    %c0_11 = arith.constant 0 : index
    %c0_12 = arith.constant 0 : index
    %20 = vector.load %arg6[%c0_10, %c0_11, %c0_12] : memref<2x8x128xf32, #tpu.memory_space<vmem>>, vector<2x8x128xf32>
    tpu.vector_store %arg6[%c0_10, %c0_11, %c0_12], %19 {strides = array<i32>} : memref<2x8x128xf32, #tpu.memory_space<vmem>>, vector<2x8x128xf32>,
    return
  }
  func.func @transform_0(%arg0: i32, %arg1: i32) -> (i32, i32, i32) {
    %c0_i32 = arith.constant 0 : i32
    %c0_i32_0 = arith.constant 0 : i32
    return %arg0, %arg1, %c0_i32 : i32, i32, i32
  }
  func.func @transform_1(%arg0: i32, %arg1: i32) -> (i32, i32) {
    %c1_i32 = arith.constant 1 : i32
    %0 = arith.addi %arg1, %c1_i32 : i32
    %c16_i32 = arith.constant 16 : i32
    %1 = arith.muli %0, %c16_i32 : i32
    %c0_i32 = arith.constant 0 : i32
    return %arg0, %1 : i32, i32
  }
  func.func @transform_2(%arg0: i32, %arg1: i32) -> (i32, i32) {
    %c0_i32 = arith.constant 0 : i32
    %c0_i32_0 = arith.constant 0 : i32
    %c0_i32_1 = arith.constant 0 : i32
    return %c0_i32, %c0_i32_0 : i32, i32
  }
  func.func @transform_3(%arg0: i32, %arg1: i32) -> (i32, i32) {
    %c0_i32 = arith.constant 0 : i32
    %c0_i32_0 = arith.constant 0 : i32
    %c0_i32_1 = arith.constant 0 : i32
    return %c0_i32, %c0_i32_0 : i32, i32
  }
  func.func @transform_4(%arg0: i32, %arg1: i32) -> (i32, i32, i32) {
    %c0_i32 = arith.constant 0 : i32
    %c0_i32_0 = arith.constant 0 : i32
    return %arg0, %arg1, %c0_i32 : i32, i32, i32
  }
}

</mosaic_0001>

<bundles_post_ra>
// kernel: resample_pallas.2
= control target key start
LH: loop header
LB: loop body
LE: loop exit
PB: predicated region body
PF: predicated region fallthrough
CT: control target
= control target key end

     0   :  { %s1326_s0 = inlined_call_operand.vmem [shape: f32[2,9,256], index: 0, kind: input, shape index: {}]   ;;  %s1327_s1 = inlined_call_operand.hbm [shape: bf16[384,128], index: 1, kind: input, shape index: {}]   ;;  %s1328_s2 = inlined_call_operand.hbm [shape: bf16[384,128], index: 2, kind: input, shape index: {}]   ;;  %s1329_s3 = inlined_call_operand.vmem [shape: f32[2,128], index: 3, kind: input, shape index: {}]   ;;  %s1330_s4 = inlined_call_operand.<no memory space> [shape: f32[], index: 4, kind: input, shape index: {}]   ;;  %s1331_s5 = inlined_call_operand.vmem [shape: f32[2,8,128], index: 5, kind: output, shape index: {}]  }
   0x1   :  { %v10_v0 = vstv %s1330_s4 }
   0x2   :  { %11 = vsyncpa [#allocation9], 0  ;;  %v1221_v1 = vld [vmem:[%s1326_s0] sm:$0xff]  ;;  %v29_v2 = vld [vmem:[%s1326_s0 + $0x8] sm:$0xff]  ;;  %s1177_s4 = smov [#allocation8]  }
   0x3   :  { %v1229_v3 = vld [vmem:[%s1326_s0 + $0x20] sm:$0xff]  ;;  %v33_v4 = vld [vmem:[%s1326_s0 + $0x28] sm:$0xff]  ;;  %s63_s27 = sshll.u32 %s1177_s4, 4  ;;  %s64_s27 = int_to_ptr.vmem [resolvable:$true] %s63_s27 }
   0x4   :  { %12 = vsyncpa [#allocation11], 0  ;;  %s1141_s28 = scalar_lea.vmem %s64_s27, 3072  ;;  %p1146_p1 = scmp.lt.s32.totalorder %s64_s27, %s64_s27 }
   0x5   :  { %p1142_p0 = scmp.ne.s32.totalorder %s64_s27, %s1141_s28  ;;  %p1147_p2 = scmp.lt.s32.totalorder %s1141_s28, %s1141_s28 }
   0x7   :  { %p1148_p3 = por %p1147_p2, %p1146_p1 }
   0x9   :  { %p1149_p4 = pnand %p1148_p3, %p1142_p0 }
   0xb   :  { %1152 = shalt.err (!%p1149_p4)
}
   0xc   :  { %s1178_s29 = smov 64   ;;  %s1179_s30 = smov 4  }
   0xd   :  { %69 = dma.hbm_to_vmem [thread:$0]  %s1327_s1, 3072, %s64_s27, [#allocation9], %s1178_s29, %s1178_s29, %s1179_s30  }
   0xe   :  { %s1180_s8 = smov [#allocation10]  }
   0xf   :  { %s75_s9 = sshll.u32 %s1180_s8, 4  ;;  %s76_s9 = int_to_ptr.vmem [resolvable:$true] %s75_s9 }
  0x10   :  { %s1161_s0 = scalar_lea.vmem %s76_s9, 3072  ;;  %p1166_p6 = scmp.lt.s32.totalorder %s76_s9, %s76_s9 }
  0x11   :  { %p1162_p5 = scmp.ne.s32.totalorder %s76_s9, %s1161_s0  ;;  %p1167_p7 = scmp.lt.s32.totalorder %s1161_s0, %s1161_s0 }
  0x13   :  { %p1168_p8 = por %p1167_p7, %p1166_p6 }
  0x15   :  { %p1169_p9 = pnand %p1168_p8, %p1162_p5 }
  0x17   :  { %1172 = shalt.err (!%p1169_p9)
}
  0x18   :  { %81 = dma.hbm_to_vmem [thread:$0]  %s1328_s2, 3072, %s76_s9, [#allocation11], %s1178_s29, %s1178_s29, %s1179_s30  }
  0x19   :  { %1173 = dma.done.wait [#allocation9], 3072  }
  0x1a   :  { %1174 = vsyncadd [#allocation9], 4294964224 }
  0x1b   :  { %1175 = dma.done.wait [#allocation11], 3072  }
  0x1c   :  { %1176 = vsyncadd [#allocation11], 4294964224  ;;  %v1240_v5 = vpack.c.bf16 %v33_v4, %v29_v2  ;;  %s1181_s1 = smov 13   ;;  %v1182_v6 = vmov 0.0   ;;  %vm1183_vm0 = vmmov 0   ;;  %v1085_v12 = vld [vmem:[#allocation8 + $0x78] sm:$0xff]   ;;  %v1251_v24 = vpack.c.bf16 %v1229_v3, %v1221_v1 }
  0x1d   :  { %154 = vrot.lane.b32.xlu0 %v10_v0, %s1181_s1  ;;  %1017 = vmatprep.subr.bf16.mxu1 %v1182_v6  ;;  %v1086_v13 = vld [vmem:[#allocation8 + $0x38] sm:$0xff]   ;;  %v1087_v14 = vld [vmem:[#allocation8 + $0x70] sm:$0xff]   ;;  %v1089_v16 = vld [vmem:[#allocation8 + $0x68] sm:$0xff]   ;;  %v1184_v58 = vmov 1966171168   ;;  %v177_v60 = vlaneseq  ;;  %vm204_vm1 = vcmask 1046528  }
  0x1e   :  { %v211_v7 = vunpack.c.l.bf16 %v1240_v5  ;;  %v214_v8 = vunpack.c.h.bf16 %v1240_v5  ;;  %1033 = vmatprep.mubr.msk.bf16.mxu1 %vm1183_vm0, %v1182_v6  ;;  %924 = vmatprep.subr.bf16.mxu0 %v1085_v12  ;;  %v1088_v15 = vld [vmem:[#allocation8 + $0x30] sm:$0xff]   ;;  %v1090_v17 = vld [vmem:[#allocation8 + $0x28] sm:$0xff]   ;;  %v1091_v18 = vld [vmem:[#allocation8 + $0x60] sm:$0xff]   ;;  %v210_v28 = vunpack.c.l.bf16 %v1251_v24  ;;  %v213_v29 = vunpack.c.h.bf16 %v1251_v24 }
  0x1f   :  { %925 = vmatpush3.bf16.msra.mxu0 %v1086_v13  ;;  %v1092_v19 = vld [vmem:[#allocation8 + $0x20] sm:$0xff]   ;;  %v1093_v20 = vld [vmem:[#allocation8 + $0x58] sm:$0xff]   ;;  %v1095_v22 = vld [vmem:[#allocation8 + $0x50] sm:$0xff]   ;;  %v175_v59 = vunpack.c.l.s4 %v1184_v58  ;;  %v178_v63 = vshrl.u32 %v177_v60, 7 }
  0x20   :  { %v217_v9 = vsub.f32 %v29_v2, %v211_v7  ;;  %v220_v10 = vsub.f32 %v33_v4, %v214_v8  ;;  %926 = vmatprep.subr.bf16.mxu0 %v1087_v14  ;;  %v1094_v21 = vld [vmem:[#allocation8 + $0x18] sm:$0xff]   ;;  %v1254_v25 = vld [vmem:[#allocation8 + $0xb0] sm:$0xff]   ;;  %v1097_v27 = vld [vmem:[#allocation8 + $0x48] sm:$0xff]   ;;  %v216_v35 = vsub.f32 %v1221_v1, %v210_v28  ;;  %v219_v36 = vsub.f32 %v1229_v3, %v213_v29 }
  0x21   :  { %v1247_v23 = vld [vmem:[#allocation8 + $0xb8] sm:$0xff]   ;;  %v1096_v26 = vld [vmem:[#allocation8 + $0x10] sm:$0xff]   ;;  %v1260_v30 = vld [vmem:[#allocation8 + $0xa8] sm:$0xff]   ;;  %v176_v62 = vunpack.c.0.s8 %v175_v59  ;;  %v196_v2 = vsub.s32 0, %v178_v63 }
  0x22   :  { %v223_v11 = vpack.c.bf16 %v220_v10, %v217_v9  ;;  %1018 = vmatpush3.bf16.msra.mxu1 %v1247_v23  ;;  %v1098_v31 = vld [vmem:[#allocation8 + $0x8] sm:$0xff]   ;;  %v1099_v32 = vld [vmem:[#allocation8 + $0x40] sm:$0xff]   ;;  %v1269_v37 = vld [vmem:[#allocation8 + $0x98] sm:$0xff]   ;;  %v222_v38 = vpack.c.bf16 %v219_v36, %v216_v35  ;;  %v190_v9 = vrot.slane %v1221_v1, 1  ;;  %v191_v10 = vrot.slane %v1229_v3, 1 }
  0x23   :  { %927 = vmatpush3.bf16.msra.mxu0 %v1088_v15  ;;  %1019 = vmatprep.subr.bf16.mxu1 %v1182_v6  ;;  %v1100_v33 = vld [vmem:[#allocation8] sm:$0xff]   ;;  %v1273_v39 = vld [vmem:[#allocation8 + $0x90] sm:$0xff]   ;;  %v1279_v40 = vld [vmem:[#allocation8 + $0x88] sm:$0xff]   ;;  %v179_v0 = vsub.s32 %v176_v62, %v178_v63 }
  0x24   :  { %497 = vmatprep.mubr.bf16.mxu0 %v223_v11  ;;  %928 = vmatprep.subr.bf16.mxu0 %v1089_v16  ;;  %v1263_v34 = vld [vmem:[#allocation8 + $0xa0] sm:$0xff]   ;;  %v1109_v42 = vld [vmem:[#allocation10 + $0x78] sm:$0xff]   ;;  %v1111_v44 = vld [vmem:[#allocation10 + $0x70] sm:$0xff]  }
  0x25   :  { %v1283_v41 = vld [vmem:[#allocation8 + $0x80] sm:$0xff]   ;;  %v1110_v43 = vld [vmem:[#allocation10 + $0x38] sm:$0xff]   ;;  %v1112_v45 = vld [vmem:[#allocation10 + $0x30] sm:$0xff]  }
  0x26   :  { %1020 = vmatpush3.bf16.msra.mxu1 %v1254_v25  ;;  %v1113_v46 = vld [vmem:[#allocation10 + $0x68] sm:$0xff]   ;;  %v1116_v48 = vld [vmem:[#allocation10 + $0x60] sm:$0xff]   ;;  %v1119_v50 = vld [vmem:[#allocation10 + $0x58] sm:$0xff]  }
  0x27   :  { %929 = vmatpush3.bf16.msra.mxu0 %v1090_v17  ;;  %1021 = vmatprep.subr.bf16.mxu1 %v1182_v6  ;;  %v1114_v47 = vld [vmem:[#allocation10 + $0x28] sm:$0xff]   ;;  %v1117_v49 = vld [vmem:[#allocation10 + $0x20] sm:$0xff]   ;;  %v1120_v51 = vld [vmem:[#allocation10 + $0x18] sm:$0xff]  }
  0x28   :  { %930 = vmatprep.subr.bf16.mxu0 %v1091_v18  ;;  %v1122_v52 = vld [vmem:[#allocation10 + $0x50] sm:$0xff]   ;;  %v1125_v54 = vld [vmem:[#allocation10 + $0x48] sm:$0xff]   ;;  %v1128_v56 = vld [vmem:[#allocation10 + $0x40] sm:$0xff]  }
  0x29   :  { %v1123_v53 = vld [vmem:[#allocation10 + $0x10] sm:$0xff]   ;;  %v1126_v55 = vld [vmem:[#allocation10 + $0x8] sm:$0xff]   ;;  %v1129_v57 = vld [vmem:[#allocation10] sm:$0xff]  }
  0x2a   :  { %1022 = vmatpush3.bf16.msra.mxu1 %v1260_v30  ;;  %v1115_v1 = vld [vmem:[#allocation10 + $0xb8] sm:$0xff]   ;;  %v1118_v3 = vld [vmem:[#allocation10 + $0xb0] sm:$0xff]  }
  0x2b   :  { %931 = vmatpush3.bf16.msra.mxu0 %v1092_v19  ;;  %1023 = vmatprep.subr.bf16.mxu1 %v1182_v6 }
  0x2c   :  { %932 = vmatprep.subr.bf16.mxu0 %v1093_v20 }
  0x2e   :  { %1024 = vmatpush3.bf16.msra.mxu1 %v1263_v34 }
  0x2f   :  { %933 = vmatpush3.bf16.msra.mxu0 %v1094_v21  ;;  %1025 = vmatprep.subr.bf16.mxu1 %v1182_v6 }
  0x30   :  { %934 = vmatprep.subr.bf16.mxu0 %v1095_v22 }
  0x32   :  { %1026 = vmatpush3.bf16.msra.mxu1 %v1269_v37 }
  0x33   :  { %935 = vmatpush3.bf16.msra.mxu0 %v1096_v26  ;;  %1027 = vmatprep.subr.bf16.mxu1 %v1182_v6 }
  0x34   :  { %936 = vmatprep.subr.bf16.mxu0 %v1097_v27 }
  0x36   :  { %1028 = vmatpush3.bf16.msra.mxu1 %v1273_v39 }
  0x37   :  { %937 = vmatpush3.bf16.msra.mxu0 %v1098_v31  ;;  %1029 = vmatprep.subr.bf16.mxu1 %v1182_v6 }
  0x38   :  { %938 = vmatprep.subr.bf16.mxu0 %v1099_v32 }
  0x3a   :  { %1030 = vmatpush3.bf16.msra.mxu1 %v1279_v40 }
  0x3b   :  { %939 = vmatpush3.bf16.msra.mxu0 %v1100_v33  ;;  %1031 = vmatprep.subr.bf16.mxu1 %v1182_v6 }
  0x3c   :  { %955 = vmatprep.subr.bf16.mxu0 %v1085_v12 }
  0x3e   :  { %498 = vmatmul.mubr.bf16.vlgmr.msra.gmra.mxu0 %v222_v38  ;;  %1032 = vmatpush3.bf16.msra.mxu1 %v1283_v41 }
  0x3f   :  { %956 = vmatpush3.bf16.msra.mxu0 %v1086_v13  ;;  %579 = vmatprep.mubr.bf16.mxu0 %v1240_v5 }
  0x40   :  { %957 = vmatprep.subr.bf16.mxu0 %v1087_v14  ;;  %1037 = vmatprep.subr.bf16.mxu1 %v1182_v6 }
  0x43   :  { %958 = vmatpush3.bf16.msra.mxu0 %v1088_v15 }
  0x44   :  { %959 = vmatprep.subr.bf16.mxu0 %v1089_v16 }
  0x47   :  { %960 = vmatpush3.bf16.msra.mxu0 %v1090_v17 }
  0x48   :  { %961 = vmatprep.subr.bf16.mxu0 %v1091_v18 }
  0x4b   :  { %962 = vmatpush3.bf16.msra.mxu0 %v1092_v19 }
  0x4c   :  { %963 = vmatprep.subr.bf16.mxu0 %v1093_v20 }
  0x4f   :  { %964 = vmatpush3.bf16.msra.mxu0 %v1094_v21  ;;  %v1121_v21 = vld [vmem:[#allocation10 + $0xa8] sm:$0xff]  }
  0x50   :  { %965 = vmatprep.subr.bf16.mxu0 %v1095_v22  ;;  %v1124_v22 = vld [vmem:[#allocation10 + $0xa0] sm:$0xff]  }
  0x53   :  { %966 = vmatpush3.bf16.msra.mxu0 %v1096_v26  ;;  %v1132_v26 = vld [vmem:[#allocation10 + $0x80] sm:$0xff]  }
  0x54   :  { %967 = vmatprep.subr.bf16.mxu0 %v1097_v27 }
  0x57   :  { %968 = vmatpush3.bf16.msra.mxu0 %v1098_v31 }
  0x58   :  { %969 = vmatprep.subr.bf16.mxu0 %v1099_v32 }
  0x5b   :  { %970 = vmatpush3.bf16.msra.mxu0 %v1100_v33 }
  0x5c   :  { %986 = vmatprep.subr.bf16.mxu0 %v1109_v42 }
  0x5e   :  { %580 = vmatmul.mubr.bf16.vlgmr.msra.gmra.mxu0 %v1251_v24 }
  0x5f   :  { %987 = vmatpush3.bf16.msra.mxu0 %v1110_v43  ;;  %805 = vmatprep.mubr.bf16.mxu0 %v1240_v5 }
  0x60   :  { %988 = vmatprep.subr.bf16.mxu0 %v1111_v44 }
  0x63   :  { %989 = vmatpush3.bf16.msra.mxu0 %v1112_v45 }
  0x64   :  { %990 = vmatprep.subr.bf16.mxu0 %v1113_v46 }
  0x67   :  { %991 = vmatpush3.bf16.msra.mxu0 %v1114_v47 }
  0x68   :  { %992 = vmatprep.subr.bf16.mxu0 %v1116_v48 }
  0x6b   :  { %993 = vmatpush3.bf16.msra.mxu0 %v1117_v49 }
  0x6c   :  { %994 = vmatprep.subr.bf16.mxu0 %v1119_v50 }
  0x6f   :  { %995 = vmatpush3.bf16.msra.mxu0 %v1120_v51 }
  0x70   :  { %996 = vmatprep.subr.bf16.mxu0 %v1122_v52 }
  0x73   :  { %997 = vmatpush3.bf16.msra.mxu0 %v1123_v53 }
  0x74   :  { %998 = vmatprep.subr.bf16.mxu0 %v1125_v54 }
  0x77   :  { %999 = vmatpush3.bf16.msra.mxu0 %v1126_v55 }
  0x78   :  { %1000 = vmatprep.subr.bf16.mxu0 %v1128_v56 }
  0x7b   :  { %1001 = vmatpush3.bf16.msra.mxu0 %v1129_v57 }
  0x7e   :  { %806 = vmatmul.mubr.bf16.vlgmr.msra.gmra.mxu0 %v1251_v24  ;;  %v1130_v24 = vld [vmem:[#allocation10 + $0x90] sm:$0xff]  }
  0x8f   :  { %v155_v61 = vpop.permute.xlu0 %154 }
  0x90   :  { %158 = vst [vmem:[#allocation12] sm:$0x3] %v155_v61 }
  0x97   :  { %v875_v4 = vld.sshfl [vmem:[#allocation12] sm:$0x11 pattern:$0x75316420] }
  0x98   :  { %v173_v5 = vcombine.high %v875_v4, %v875_v4  ;;  %v180_v7 = vrot.slane %v875_v4, %v179_v0 }
  0x9a   :  { %v187_v8 = vrot.slane %v173_v5, %v179_v0  ;;  %v197_v11 = vrot.slane %v180_v7, %v196_v2 }
  0x9c   :  { %v201_v12 = vrot.slane %v187_v8, %v196_v2  ;;  %v205_v13 = vsel %vm204_vm1, %v190_v9, %v197_v11 }
  0x9e   :  { %v206_v14 = vsel %vm204_vm1, %v191_v10, %v201_v12 }
  0x9f   :  { %v209_v15 = vpack.c.bf16 %v206_v14, %v205_v13 }
  0xa1   :  { %v212_v16 = vunpack.c.l.bf16 %v209_v15  ;;  %v215_v17 = vunpack.c.h.bf16 %v209_v15 }
  0xa3   :  { %v218_v18 = vsub.f32 %v205_v13, %v212_v16  ;;  %v221_v19 = vsub.f32 %v206_v14, %v215_v17 }
  0xa5   :  { %v224_v20 = vpack.c.bf16 %v221_v19, %v218_v18 }
  0xa7   :  { %1034 = vmatmul.mubr.bf16.vlgmr.msra.gmra.mxu1 %v224_v20 }
  0xa8   :  { %1038 = vmatpush3.bf16.msra.mxu1 %v1247_v23  ;;  %1053 = vmatprep.mubr.msk.bf16.mxu1 %vm1183_vm0, %v1182_v6  ;;  %v1127_v23 = vld [vmem:[#allocation10 + $0x98] sm:$0xff]  }
  0xa9   :  { %1039 = vmatprep.subr.bf16.mxu1 %v1182_v6 }
  0xac   :  { %1040 = vmatpush3.bf16.msra.mxu1 %v1254_v25  ;;  %v1131_v25 = vld [vmem:[#allocation10 + $0x88] sm:$0xff]  }
  0xad   :  { %1041 = vmatprep.subr.bf16.mxu1 %v1182_v6 }
  0xb0   :  { %1042 = vmatpush3.bf16.msra.mxu1 %v1260_v30 }
  0xb1   :  { %1043 = vmatprep.subr.bf16.mxu1 %v1182_v6 }
  0xb4   :  { %1044 = vmatpush3.bf16.msra.mxu1 %v1263_v34 }
  0xb5   :  { %1045 = vmatprep.subr.bf16.mxu1 %v1182_v6 }
  0xb8   :  { %1046 = vmatpush3.bf16.msra.mxu1 %v1269_v37 }
  0xb9   :  { %1047 = vmatprep.subr.bf16.mxu1 %v1182_v6 }
  0xbc   :  { %1048 = vmatpush3.bf16.msra.mxu1 %v1273_v39 }
  0xbd   :  { %1049 = vmatprep.subr.bf16.mxu1 %v1182_v6 }
  0xc0   :  { %1050 = vmatpush3.bf16.msra.mxu1 %v1279_v40 }
  0xc1   :  { %1051 = vmatprep.subr.bf16.mxu1 %v1182_v6 }
  0xc4   :  { %1052 = vmatpush3.bf16.msra.mxu1 %v1283_v41 }
  0xc5   :  { %1057 = vmatprep.subr.bf16.mxu1 %v1182_v6 }
  0xc7   :  { %1054 = vmatmul.mubr.bf16.vlgmr.msra.gmra.mxu1 %v209_v15 }
  0xc8   :  { %1058 = vmatpush3.bf16.msra.mxu1 %v1115_v1  ;;  %1073 = vmatprep.mubr.msk.bf16.mxu1 %vm1183_vm0, %v1182_v6 }
  0xc9   :  { %1059 = vmatprep.subr.bf16.mxu1 %v1182_v6 }
  0xcc   :  { %1060 = vmatpush3.bf16.msra.mxu1 %v1118_v3 }
  0xcd   :  { %1061 = vmatprep.subr.bf16.mxu1 %v1182_v6 }
  0xd0   :  { %1062 = vmatpush3.bf16.msra.mxu1 %v1121_v21 }
  0xd1   :  { %1063 = vmatprep.subr.bf16.mxu1 %v1182_v6 }
  0xd4   :  { %1064 = vmatpush3.bf16.msra.mxu1 %v1124_v22 }
  0xd5   :  { %1065 = vmatprep.subr.bf16.mxu1 %v1182_v6 }
  0xd8   :  { %1066 = vmatpush3.bf16.msra.mxu1 %v1127_v23 }
  0xd9   :  { %1067 = vmatprep.subr.bf16.mxu1 %v1182_v6 }
  0xdc   :  { %1068 = vmatpush3.bf16.msra.mxu1 %v1130_v24 }
  0xdd   :  { %1069 = vmatprep.subr.bf16.mxu1 %v1182_v6 }
  0xe0   :  { %1070 = vmatpush3.bf16.msra.mxu1 %v1131_v25 }
  0xe1   :  { %1071 = vmatprep.subr.bf16.mxu1 %v1182_v6 }
  0xe4   :  { %1072 = vmatpush3.bf16.msra.mxu1 %v1132_v26 }
  0xe7   :  { %1074 = vmatmul.mubr.bf16.vlgmr.msra.gmra.mxu1 %v209_v15 }
  0xfe   :  { %v940_v31 = vpop.f32.mrf.mxu0 }
 0x100   :  { %v941_v32 = vpop.f32.mrf.mxu0 }
 0x101   :  { %v942_v44 = vadd.f32 %v941_v32, %v940_v31 }
 0x102   :  { %v943_v33 = vpop.f32.mrf.mxu0 }
 0x104   :  { %v944_v35 = vpop.f32.mrf.mxu0 }
 0x105   :  { %v945_v48 = vadd.f32 %v944_v35, %v943_v33 }
 0x11e   :  { %v971_v38 = vpop.f32.mrf.mxu0 }
 0x120   :  { %v972_v40 = vpop.f32.mrf.mxu0 }
 0x121   :  { %v973_v46 = vadd.f32 %v972_v40, %v971_v38 }
 0x122   :  { %v974_v41 = vpop.f32.mrf.mxu0 }
 0x124   :  { %v975_v42 = vpop.f32.mrf.mxu0 }
 0x125   :  { %v976_v50 = vadd.f32 %v975_v42, %v974_v41 }
 0x13e   :  { %v1002_v43 = vpop.f32.mrf.mxu0 }
 0x140   :  { %v1003_v6 = vpop.f32.mrf.mxu0 }
 0x141   :  { %v1004_v52 = vadd.f32 %v1003_v6, %v1002_v43 }
 0x142   :  { %v1005_v47 = vpop.f32.mrf.mxu0 }
 0x144   :  { %v1006_v53 = vpop.f32.mrf.mxu0 }
 0x145   :  { %v1007_v59 = vadd.f32 %v1006_v53, %v1005_v47 }
 0x167   :  { %v540_v27 = vpop.f32.mrf.mxu1 }
 0x168   :  { %v541_v45 = vadd.f32 %v942_v44, %v540_v27 }
 0x169   :  { %v1035_v28 = vpop.f32.mrf.mxu1 }
 0x16a   :  { %v582_v51 = vadd.f32 %v973_v46, %v541_v45 }
 0x16b   :  { %v543_v29 = vpop.f32.mrf.mxu1 }
 0x16c   :  { %v544_v49 = vadd.f32 %v945_v48, %v543_v29 }
 0x16d   :  { %v1036_v30 = vpop.f32.mrf.mxu1 }
 0x16e   :  { %v585_v58 = vadd.f32 %v976_v50, %v544_v49 }
 0x187   :  { %v622_v34 = vpop.f32.mrf.mxu1 }
 0x188   :  { %v623_v55 = vadd.f32 %v622_v34, %v582_v51 }
 0x189   :  { %v1055_v36 = vpop.f32.mrf.mxu1 }
 0x18b   :  { %v625_v37 = vpop.f32.mrf.mxu1 }
 0x18c   :  { %v626_v62 = vadd.f32 %v625_v37, %v585_v58 }
 0x18d   :  { %v1056_v39 = vpop.f32.mrf.mxu1 }
 0x1a7   :  { %v848_v54 = vpop.f32.mrf.mxu1 }
 0x1a8   :  { %v849_v56 = vadd.f32 %v1004_v52, %v848_v54 }
 0x1a9   :  { %v1075_v57 = vpop.f32.mrf.mxu1 }
 0x1aa   :  { %v855_v60 = vadd.f32 %v849_v56, %v623_v55 }
 0x1ab   :  { %v851_v61 = vpop.f32.mrf.mxu1 }
 0x1ac   :  { %857 = vst [vmem:[%s1331_s5] sm:$0xff] %v855_v60  ;;  %v852_v63 = vadd.f32 %v1007_v59, %v851_v61 }
 0x1ad   :  { %v1076_v0 = vpop.f32.mrf.mxu1 }
 0x1ae   :  { %v856_v2 = vadd.f32 %v852_v63, %v626_v62 }
 0x1b0   :  { %858 = vst [vmem:[%s1331_s5 + $0x8] sm:$0xff] %v856_v2 }
 0x1b1   :  { %863 = vsyncpa [#allocation9], 1 }
 0x1b2   :  { %864 = vsyncpa [#allocation11], 1 }

</bundles_post_ra>
